<compile_context>
chip_gen: v7x
topology: tpu7x:2x2x1
jax: 0.10.0
libtpu: 0.0.40
codegen_flags: <defaults>
</compile_context>

<pallas_src>
import functools

import jax
import jax.numpy as jnp
from jax.experimental import pallas as pl
from jax.experimental.pallas import tpu as pltpu


def _round_up(x, m):
    return ((x + m - 1) // m) * m


def _ce_dice_kernel(logits_ref, tgt_ref, stats_ref, *, num_classes):
    """One fused pass producing per-tile partial sums for CE and soft-Dice.

    logits_ref : (B, C, S, 128)   model logits (any float dtype; cast to f32)
    tgt_ref    : (B, S, 128)      int class ids; negative => ignored / padding
    stats_ref  : (1, 3*C+1, 128)  lane-dense partial sums, rows:
                   [0 , C )  per-class intersection  sum_p prob_c * onehot_c
                   [C , 2C)  per-class prob sum      sum_p prob_c
                   [2C, 3C)  per-class target count  sum_p onehot_c
                   [3C]      cross-entropy partial   sum_p (lse - logit_target)
    """
    C = num_classes
    B = logits_ref.shape[0]

    x = logits_ref[...].astype(jnp.float32)          # (B, C, S, L)
    tgt = tgt_ref[...].astype(jnp.int32)             # (B, S, L)
    valid = tgt >= 0                                 # padding / ignore mask

    # Class axis fully unrolled (C is small & static): pure VPU / EUP work,
    # no cross-lane class reductions.
    rows = [x[:, c] for c in range(C)]               # C x (B, S, L)
    eqs = [tgt == c for c in range(C)]               # hoisted once, reused 3x

    m = rows[0]
    for r in rows[1:]:
        m = jnp.maximum(m, r)                        # running max over classes
    exps = [jnp.exp(r - m) for r in rows]            # EUP
    se = exps[0]
    for e in exps[1:]:
        se = se + e
    lse = m + jnp.log(se)                            # logsumexp over classes

    picked = jnp.where(eqs[0], rows[0], 0.0)         # x[b, tgt, p] via compare+select
    for c in range(1, C):
        picked = picked + jnp.where(eqs[c], rows[c], 0.0)

    # Selects (not multiplies by a mask) so garbage/NaN logits in a ragged
    # last tile cannot poison the partial sums.
    ce_pix = jnp.where(valid, lse - picked, 0.0)

    inv_se = pl.reciprocal(se, approx=True)          # EUP vrcp, frees the VALU slot

    def reduce_bs(v):                                # (B, S, L) -> (1, L)
        acc = v[0]
        for b in range(1, B):                        # unrolled VPU batch reduce
            acc = acc + v[b]
        return jnp.sum(acc, axis=0, keepdims=True)   # sublane reduce; lanes stay

    for c in range(C):
        p_c = jnp.where(valid, exps[c] * inv_se, 0.0)                    # masked prob
        stats_ref[:, c:c + 1, :] = reduce_bs(jnp.where(eqs[c], p_c, 0.0))[None]
        stats_ref[:, C + c:C + c + 1, :] = reduce_bs(p_c)[None]
        stats_ref[:, 2 * C + c:2 * C + c + 1, :] = reduce_bs(
            jnp.where(eqs[c], 1.0, 0.0))[None]
    stats_ref[:, 3 * C:3 * C + 1, :] = reduce_bs(ce_pix)[None]


def _choose_rows_per_tile(n_rows, batch, num_classes, itemsize, block_bytes):
    """Sublane rows (of 128 pixels) per grid step, ~block_bytes of logits/step."""
    if n_rows <= 8:
        return n_rows                                   # single tile == full extent
    bytes_per_row = batch * num_classes * 128 * itemsize
    s = max(8, int(block_bytes) // bytes_per_row)
    if s >= n_rows:
        # Whole problem fits in one block; still make >= 2 tiles so the
        # "parallel" grid axis can use both v7x TensorCores.
        half = -(-n_rows // 2)
        s32 = _round_up(half, 32)
        s = s32 if s32 < n_rows else _round_up(half, 8)
    elif s >= 32:
        s = (s // 32) * 32       # multiple of 32 -> native int8 target tiling
    else:
        s = (s // 8) * 8         # multiple of 8  -> native f32 tiling
    return max(8, min(s, n_rows))


def cross_entropy_and_dice_losses(predicted_masks, masks, *,
                                  block_bytes=4 << 20, eps=1e-6):
    """One fused Pallas pass over NCHW logits -> (cross_entropy, soft_dice_loss).

    Assumes standard ignore_index semantics: every non-negative target is < C
    (so the valid-pixel count equals the sum of per-class target counts).
    """
    B, C, H, W = predicted_masks.shape
    assert masks.shape == (B, H, W)
    HW = H * W

    # Native NCHW; contiguous reshape only (no transpose / no HBM copy).
    logits = predicted_masks.reshape(B, C, HW)
    if HW % 128 != 0:
        # Rare fallback: the lane axis must be a multiple of 128.
        # TODO(synk): avoid this HBM pad for HW % 128 != 0 (tail handling).
        logits = jnp.pad(logits, ((0, 0), (0, 0), (0, _round_up(HW, 128) - HW)))
    n_rows = logits.shape[-1] // 128
    logits = logits.reshape(B, C, n_rows, 128)

    S = _choose_rows_per_tile(n_rows, B, C, logits.dtype.itemsize, block_bytes)
    num_tiles = -(-n_rows // S)          # ragged last tile is masked in-kernel
    rows_padded = num_tiles * S

    # Narrow targets (4x fewer HBM bytes) only when the block tiling is native.
    use_int8 = (C <= 127) and (S % 32 == 0 or S == rows_padded)
    tgt_dtype = jnp.int8 if use_int8 else jnp.int32
    targets = masks.reshape(B, HW).astype(tgt_dtype)
    if rows_padded * 128 != HW:
        # Pad only the small target stream; padded pixels become -1 == ignored.
        targets = jnp.pad(targets, ((0, 0), (0, rows_padded * 128 - HW)),
                          constant_values=-1)
    targets = targets.reshape(B, rows_padded, 128)

    kernel = functools.partial(_ce_dice_kernel, num_classes=C)
    stats = pl.pallas_call(
        kernel,
        out_shape=jax.ShapeDtypeStruct((num_tiles, 3 * C + 1, 128), jnp.float32),
        grid=(num_tiles,),
        in_specs=[
            pl.BlockSpec((B, C, S, 128), lambda t: (0, 0, t, 0)),
            pl.BlockSpec((B, S, 128), lambda t: (0, t, 0)),
        ],
        out_specs=pl.BlockSpec((1, 3 * C + 1, 128), lambda t: (t, 0, 0)),
        compiler_params=pltpu.CompilerParams(
            dimension_semantics=("parallel",),   # independent tiles -> both v7x TCs
        ),
    )(logits, targets)

    # Tiny final reductions: XLA tree-sum over tiles and lanes.
    sums = jnp.sum(stats, axis=(0, 2))               # (3C+1,)
    inter_c = sums[0:C]
    psum_c = sums[C:2 * C]
    ycnt_c = sums[2 * C:3 * C]
    ce_sum = sums[3 * C]

    n_valid = jnp.maximum(jnp.sum(ycnt_c), 1.0)      # no extra HBM pass over masks
    ce = ce_sum / n_valid                            # mean CE over non-ignored pixels
    dice_score = (2.0 * inter_c + eps) / (psum_c + ycnt_c + eps)
    dice = 1.0 - jnp.mean(dice_score)
    return ce, dice


class CombinedLoss:
    """Pallas port of the PyTorch CombinedLoss: loss = sum_i coeff_i * loss_i(pred, masks).

    The `losses` list of the PyTorch module is instantiated as the standard
    [CrossEntropyLoss, SoftDiceLoss] pair; both come out of a single fused
    Pallas pass, so the logits are read from HBM exactly once.
    """

    def __init__(self, coefficients=(0.4, 0.6), block_bytes=4 << 20):
        self.coefficients = tuple(coefficients)
        self.block_bytes = block_bytes

    def __call__(self, predicted_masks, masks):
        losses = cross_entropy_and_dice_losses(
            predicted_masks, masks, block_bytes=self.block_bytes)
        total = 0.0
        for loss_value, coefficient in zip(losses, self.coefficients):
            total = total + coefficient * loss_value
        return total


if __name__ == "__main__":
    key = jax.random.PRNGKey(0)

    def reference(predicted_masks, masks, eps=1e-6):
        # pure-JAX reference: 0.4 * CrossEntropy + 0.6 * SoftDice
        C = predicted_masks.shape[1]
        logits2d = jnp.transpose(predicted_masks, (0, 2, 3, 1)).reshape(-1, C)
        tgt = masks.reshape(-1)
        lse = jax.nn.logsumexp(logits2d, axis=-1)
        picked = jnp.take_along_axis(logits2d, tgt[:, None], axis=-1)[:, 0]
        ce = jnp.mean(lse - picked)
        probs = jax.nn.softmax(logits2d, axis=-1)
        onehot = jax.nn.one_hot(tgt, C, dtype=jnp.float32)
        inter = jnp.sum(probs * onehot, axis=0)
        union = jnp.sum(probs, axis=0) + jnp.sum(onehot, axis=0)
        dice = 1.0 - jnp.mean((2.0 * inter + eps) / (union + eps))
        return 0.4 * ce + 0.6 * dice

    loss_fn = CombinedLoss(coefficients=[0.4, 0.6])

    # Case 1: small shape consistent with the module (single tile, int8 targets).
    k1, k2 = jax.random.split(key)
    B, C, H, W = 2, 4, 16, 16
    pm = jax.random.normal(k1, (B, C, H, W), dtype=jnp.float32)
    mk = jax.random.randint(k2, (B, H, W), 0, C, dtype=jnp.int32)
    got = jax.block_until_ready(loss_fn(pm, mk))
    ref = reference(pm, mk)
    # approx reciprocal (Dice path) -> slightly looser tolerance
    assert jnp.allclose(got, ref, rtol=2e-3, atol=2e-3), (got, ref)

    # Case 2: exercises the multi-tile + ragged-last-tile (masked OOB) path.
    k3, k4 = jax.random.split(k2)
    B2, C2, H2, W2 = 2, 4, 48, 48
    pm2 = jax.random.normal(k3, (B2, C2, H2, W2), dtype=jnp.float32)
    mk2 = jax.random.randint(k4, (B2, H2, W2), 0, C2, dtype=jnp.int32)
    got2 = jax.block_until_ready(loss_fn(pm2, mk2))
    ref2 = reference(pm2, mk2)
    assert jnp.allclose(got2, ref2, rtol=2e-3, atol=2e-3), (got2, ref2)

    print("KERNEL_OK")
</pallas_src>

<mosaic_0001>
module attributes {stable_mosaic.version = 11 : i64} {
  func.func @_ce_dice_kernel(%arg0: i32, %arg1: memref<2x4x2x128xf32, #tpu.memory_space<vmem>>, %arg2: memref<2x2x128xi8, #tpu.memory_space<vmem>>, %arg3: memref<1x13x128xf32, #tpu.memory_space<vmem>>) attributes {dimension_semantics = [#tpu.dimension_semantics<parallel>], iteration_bounds = array<i64: 1>, scalar_prefetch = 0 : i64, scratch_operands = 0 : i64, tpu.core_type = #tpu.core_type<tc>, window_params = [{transform_indices = @transform_0, window_bounds = array<i64: 2, 4, 2, 128>}, {transform_indices = @transform_1, window_bounds = array<i64: 2, 2, 128>}, {transform_indices = @transform_2, window_bounds = array<i64: 1, 13, 128>}]} {
    %c0 = arith.constant 0 : index
    %c0_0 = arith.constant 0 : index
    %c0_1 = arith.constant 0 : index
    %c0_2 = arith.constant 0 : index
    %0 = vector.load %arg1[%c0, %c0_0, %c0_1, %c0_2] : memref<2x4x2x128xf32, #tpu.memory_space<vmem>>, vector<2x4x2x128xf32>
    %c0_3 = arith.constant 0 : index
    %c0_4 = arith.constant 0 : index
    %c0_5 = arith.constant 0 : index
    %1 = vector.load %arg2[%c0_3, %c0_4, %c0_5] : memref<2x2x128xi8, #tpu.memory_space<vmem>>, vector<2x2x128xi8>
    %2 = arith.extsi %1 : vector<2x2x128xi8> to vector<2x2x128xi32>
    %c0_i32 = arith.constant 0 : i32
    %3 = vector.broadcast %c0_i32 : i32 to vector<2x2x128xi32>
    %4 = arith.cmpi sge, %2, %3 : vector<2x2x128xi32>
    %5 = vector.extract_strided_slice %0 {offsets = [0, 0, 0, 0], sizes = [2, 1, 2, 128], strides = [1, 1, 1, 1]} : vector<2x4x2x128xf32> to vector<2x1x2x128xf32>
    %6 = vector.shape_cast %5 : vector<2x1x2x128xf32> to vector<2x2x128xf32>
    %7 = vector.extract_strided_slice %0 {offsets = [0, 1, 0, 0], sizes = [2, 1, 2, 128], strides = [1, 1, 1, 1]} : vector<2x4x2x128xf32> to vector<2x1x2x128xf32>
    %8 = vector.shape_cast %7 : vector<2x1x2x128xf32> to vector<2x2x128xf32>
    %9 = vector.extract_strided_slice %0 {offsets = [0, 2, 0, 0], sizes = [2, 1, 2, 128], strides = [1, 1, 1, 1]} : vector<2x4x2x128xf32> to vector<2x1x2x128xf32>
    %10 = vector.shape_cast %9 : vector<2x1x2x128xf32> to vector<2x2x128xf32>
    %11 = vector.extract_strided_slice %0 {offsets = [0, 3, 0, 0], sizes = [2, 1, 2, 128], strides = [1, 1, 1, 1]} : vector<2x4x2x128xf32> to vector<2x1x2x128xf32>
    %12 = vector.shape_cast %11 : vector<2x1x2x128xf32> to vector<2x2x128xf32>
    %c0_i32_6 = arith.constant 0 : i32
    %13 = vector.broadcast %c0_i32_6 : i32 to vector<2x2x128xi32>
    %14 = arith.cmpi eq, %2, %13 : vector<2x2x128xi32>
    %c1_i32 = arith.constant 1 : i32
    %15 = vector.broadcast %c1_i32 : i32 to vector<2x2x128xi32>
    %16 = arith.cmpi eq, %2, %15 : vector<2x2x128xi32>
    %c2_i32 = arith.constant 2 : i32
    %17 = vector.broadcast %c2_i32 : i32 to vector<2x2x128xi32>
    %18 = arith.cmpi eq, %2, %17 : vector<2x2x128xi32>
    %c3_i32 = arith.constant 3 : i32
    %19 = vector.broadcast %c3_i32 : i32 to vector<2x2x128xi32>
    %20 = arith.cmpi eq, %2, %19 : vector<2x2x128xi32>
    %21 = arith.maximumf %6, %8 : vector<2x2x128xf32>
    %22 = arith.maximumf %21, %10 : vector<2x2x128xf32>
    %23 = arith.maximumf %22, %12 : vector<2x2x128xf32>
    %24 = arith.subf %6, %23 : vector<2x2x128xf32>
    %25 = math.exp %24 : vector<2x2x128xf32>
    %26 = arith.subf %8, %23 : vector<2x2x128xf32>
    %27 = math.exp %26 : vector<2x2x128xf32>
    %28 = arith.subf %10, %23 : vector<2x2x128xf32>
    %29 = math.exp %28 : vector<2x2x128xf32>
    %30 = arith.subf %12, %23 : vector<2x2x128xf32>
    %31 = math.exp %30 : vector<2x2x128xf32>
    %32 = arith.addf %25, %27 : vector<2x2x128xf32>
    %33 = arith.addf %32, %29 : vector<2x2x128xf32>
    %34 = arith.addf %33, %31 : vector<2x2x128xf32>
    %35 = math.log %34 : vector<2x2x128xf32>
    %36 = arith.addf %23, %35 : vector<2x2x128xf32>
    %cst = arith.constant 0.000000e+00 : f32
    %37 = vector.broadcast %cst : f32 to vector<2x2x128xf32>
    %38 = arith.select %14, %6, %37 : vector<2x2x128xi1>, vector<2x2x128xf32>
    %cst_7 = arith.constant 0.000000e+00 : f32
    %39 = vector.broadcast %cst_7 : f32 to vector<2x2x128xf32>
    %40 = arith.select %16, %8, %39 : vector<2x2x128xi1>, vector<2x2x128xf32>
    %41 = arith.addf %38, %40 : vector<2x2x128xf32>
    %cst_8 = arith.constant 0.000000e+00 : f32
    %42 = vector.broadcast %cst_8 : f32 to vector<2x2x128xf32>
    %43 = arith.select %18, %10, %42 : vector<2x2x128xi1>, vector<2x2x128xf32>
    %44 = arith.addf %41, %43 : vector<2x2x128xf32>
    %cst_9 = arith.constant 0.000000e+00 : f32
    %45 = vector.broadcast %cst_9 : f32 to vector<2x2x128xf32>
    %46 = arith.select %20, %12, %45 : vector<2x2x128xi1>, vector<2x2x128xf32>
    %47 = arith.addf %44, %46 : vector<2x2x128xf32>
    %48 = arith.subf %36, %47 : vector<2x2x128xf32>
    %cst_10 = arith.constant 0.000000e+00 : f32
    %49 = vector.broadcast %cst_10 : f32 to vector<2x2x128xf32>
    %50 = arith.select %4, %48, %49 : vector<2x2x128xi1>, vector<2x2x128xf32>
    %51 = tpu.reciprocal %34 {approx = true} : vector<2x2x128xf32> -> vector<2x2x128xf32>
    %52 = arith.mulf %25, %51 : vector<2x2x128xf32>
    %cst_11 = arith.constant 0.000000e+00 : f32
    %53 = vector.broadcast %cst_11 : f32 to vector<2x2x128xf32>
    %54 = arith.select %4, %52, %53 : vector<2x2x128xi1>, vector<2x2x128xf32>
    %cst_12 = arith.constant 0.000000e+00 : f32
    %55 = vector.broadcast %cst_12 : f32 to vector<2x2x128xf32>
    %56 = arith.select %14, %54, %55 : vector<2x2x128xi1>, vector<2x2x128xf32>
    %57 = vector.extract_strided_slice %56 {offsets = [0, 0, 0], sizes = [1, 2, 128], strides = [1, 1, 1]} : vector<2x2x128xf32> to vector<1x2x128xf32>
    %58 = vector.shape_cast %57 : vector<1x2x128xf32> to vector<2x128xf32>
    %59 = vector.extract_strided_slice %56 {offsets = [1, 0, 0], sizes = [1, 2, 128], strides = [1, 1, 1]} : vector<2x2x128xf32> to vector<1x2x128xf32>
    %60 = vector.shape_cast %59 : vector<1x2x128xf32> to vector<2x128xf32>
    %61 = arith.addf %58, %60 : vector<2x128xf32>
    %cst_13 = arith.constant dense<0.000000e+00> : vector<128xf32>
    %62 = vector.multi_reduction <add>, %61, %cst_13 [0] : vector<2x128xf32> to vector<128xf32>
    %63 = vector.shape_cast %62 : vector<128xf32> to vector<1x128xf32>
    %64 = vector.shape_cast %63 : vector<1x128xf32> to vector<1x1x128xf32>
    %c0_14 = arith.constant 0 : index
    %c0_15 = arith.constant 0 : index
    %c0_16 = arith.constant 0 : index
    %65 = vector.load %arg3[%c0_14, %c0_15, %c0_16] : memref<1x13x128xf32, #tpu.memory_space<vmem>>, vector<1x1x128xf32>
    tpu.vector_store %arg3[%c0_14, %c0_15, %c0_16], %64 {strides = array<i32>} : memref<1x13x128xf32, #tpu.memory_space<vmem>>, vector<1x1x128xf32>,
    %66 = vector.extract_strided_slice %54 {offsets = [0, 0, 0], sizes = [1, 2, 128], strides = [1, 1, 1]} : vector<2x2x128xf32> to vector<1x2x128xf32>
    %67 = vector.shape_cast %66 : vector<1x2x128xf32> to vector<2x128xf32>
    %68 = vector.extract_strided_slice %54 {offsets = [1, 0, 0], sizes = [1, 2, 128], strides = [1, 1, 1]} : vector<2x2x128xf32> to vector<1x2x128xf32>
    %69 = vector.shape_cast %68 : vector<1x2x128xf32> to vector<2x128xf32>
    %70 = arith.addf %67, %69 : vector<2x128xf32>
    %cst_17 = arith.constant dense<0.000000e+00> : vector<128xf32>
    %71 = vector.multi_reduction <add>, %70, %cst_17 [0] : vector<2x128xf32> to vector<128xf32>
    %72 = vector.shape_cast %71 : vector<128xf32> to vector<1x128xf32>
    %73 = vector.shape_cast %72 : vector<1x128xf32> to vector<1x1x128xf32>
    %c0_18 = arith.constant 0 : index
    %c4 = arith.constant 4 : index
    %c0_19 = arith.constant 0 : index
    %74 = vector.load %arg3[%c0_18, %c4, %c0_19] : memref<1x13x128xf32, #tpu.memory_space<vmem>>, vector<1x1x128xf32>
    tpu.vector_store %arg3[%c0_18, %c4, %c0_19], %73 {strides = array<i32>} : memref<1x13x128xf32, #tpu.memory_space<vmem>>, vector<1x1x128xf32>,
    %cst_20 = arith.constant 1.000000e+00 : f32
    %cst_21 = arith.constant 0.000000e+00 : f32
    %75 = vector.broadcast %cst_20 : f32 to vector<2x2x128xf32>
    %76 = vector.broadcast %cst_21 : f32 to vector<2x2x128xf32>
    %77 = arith.select %14, %75, %76 : vector<2x2x128xi1>, vector<2x2x128xf32>
    %78 = vector.extract_strided_slice %77 {offsets = [0, 0, 0], sizes = [1, 2, 128], strides = [1, 1, 1]} : vector<2x2x128xf32> to vector<1x2x128xf32>
    %79 = vector.shape_cast %78 : vector<1x2x128xf32> to vector<2x128xf32>
    %80 = vector.extract_strided_slice %77 {offsets = [1, 0, 0], sizes = [1, 2, 128], strides = [1, 1, 1]} : vector<2x2x128xf32> to vector<1x2x128xf32>
    %81 = vector.shape_cast %80 : vector<1x2x128xf32> to vector<2x128xf32>
    %82 = arith.addf %79, %81 : vector<2x128xf32>
    %cst_22 = arith.constant dense<0.000000e+00> : vector<128xf32>
    %83 = vector.multi_reduction <add>, %82, %cst_22 [0] : vector<2x128xf32> to vector<128xf32>
    %84 = vector.shape_cast %83 : vector<128xf32> to vector<1x128xf32>
    %85 = vector.shape_cast %84 : vector<1x128xf32> to vector<1x1x128xf32>
    %c0_23 = arith.constant 0 : index
    %c8 = arith.constant 8 : index
    %c0_24 = arith.constant 0 : index
    %86 = vector.load %arg3[%c0_23, %c8, %c0_24] : memref<1x13x128xf32, #tpu.memory_space<vmem>>, vector<1x1x128xf32>
    tpu.vector_store %arg3[%c0_23, %c8, %c0_24], %85 {strides = array<i32>} : memref<1x13x128xf32, #tpu.memory_space<vmem>>, vector<1x1x128xf32>,
    %87 = arith.mulf %27, %51 : vector<2x2x128xf32>
    %cst_25 = arith.constant 0.000000e+00 : f32
    %88 = vector.broadcast %cst_25 : f32 to vector<2x2x128xf32>
    %89 = arith.select %4, %87, %88 : vector<2x2x128xi1>, vector<2x2x128xf32>
    %cst_26 = arith.constant 0.000000e+00 : f32
    %90 = vector.broadcast %cst_26 : f32 to vector<2x2x128xf32>
    %91 = arith.select %16, %89, %90 : vector<2x2x128xi1>, vector<2x2x128xf32>
    %92 = vector.extract_strided_slice %91 {offsets = [0, 0, 0], sizes = [1, 2, 128], strides = [1, 1, 1]} : vector<2x2x128xf32> to vector<1x2x128xf32>
    %93 = vector.shape_cast %92 : vector<1x2x128xf32> to vector<2x128xf32>
    %94 = vector.extract_strided_slice %91 {offsets = [1, 0, 0], sizes = [1, 2, 128], strides = [1, 1, 1]} : vector<2x2x128xf32> to vector<1x2x128xf32>
    %95 = vector.shape_cast %94 : vector<1x2x128xf32> to vector<2x128xf32>
    %96 = arith.addf %93, %95 : vector<2x128xf32>
    %cst_27 = arith.constant dense<0.000000e+00> : vector<128xf32>
    %97 = vector.multi_reduction <add>, %96, %cst_27 [0] : vector<2x128xf32> to vector<128xf32>
    %98 = vector.shape_cast %97 : vector<128xf32> to vector<1x128xf32>
    %99 = vector.shape_cast %98 : vector<1x128xf32> to vector<1x1x128xf32>
    %c0_28 = arith.constant 0 : index
    %c1 = arith.constant 1 : index
    %c0_29 = arith.constant 0 : index
    %100 = vector.load %arg3[%c0_28, %c1, %c0_29] : memref<1x13x128xf32, #tpu.memory_space<vmem>>, vector<1x1x128xf32>
    tpu.vector_store %arg3[%c0_28, %c1, %c0_29], %99 {strides = array<i32>} : memref<1x13x128xf32, #tpu.memory_space<vmem>>, vector<1x1x128xf32>,
    %101 = vector.extract_strided_slice %89 {offsets = [0, 0, 0], sizes = [1, 2, 128], strides = [1, 1, 1]} : vector<2x2x128xf32> to vector<1x2x128xf32>
    %102 = vector.shape_cast %101 : vector<1x2x128xf32> to vector<2x128xf32>
    %103 = vector.extract_strided_slice %89 {offsets = [1, 0, 0], sizes = [1, 2, 128], strides = [1, 1, 1]} : vector<2x2x128xf32> to vector<1x2x128xf32>
    %104 = vector.shape_cast %103 : vector<1x2x128xf32> to vector<2x128xf32>
    %105 = arith.addf %102, %104 : vector<2x128xf32>
    %cst_30 = arith.constant dense<0.000000e+00> : vector<128xf32>
    %106 = vector.multi_reduction <add>, %105, %cst_30 [0] : vector<2x128xf32> to vector<128xf32>
    %107 = vector.shape_cast %106 : vector<128xf32> to vector<1x128xf32>
    %108 = vector.shape_cast %107 : vector<1x128xf32> to vector<1x1x128xf32>
    %c0_31 = arith.constant 0 : index
    %c5 = arith.constant 5 : index
    %c0_32 = arith.constant 0 : index
    %109 = vector.load %arg3[%c0_31, %c5, %c0_32] : memref<1x13x128xf32, #tpu.memory_space<vmem>>, vector<1x1x128xf32>
    tpu.vector_store %arg3[%c0_31, %c5, %c0_32], %108 {strides = array<i32>} : memref<1x13x128xf32, #tpu.memory_space<vmem>>, vector<1x1x128xf32>,
    %cst_33 = arith.constant 1.000000e+00 : f32
    %cst_34 = arith.constant 0.000000e+00 : f32
    %110 = vector.broadcast %cst_33 : f32 to vector<2x2x128xf32>
    %111 = vector.broadcast %cst_34 : f32 to vector<2x2x128xf32>
    %112 = arith.select %16, %110, %111 : vector<2x2x128xi1>, vector<2x2x128xf32>
    %113 = vector.extract_strided_slice %112 {offsets = [0, 0, 0], sizes = [1, 2, 128], strides = [1, 1, 1]} : vector<2x2x128xf32> to vector<1x2x128xf32>
    %114 = vector.shape_cast %113 : vector<1x2x128xf32> to vector<2x128xf32>
    %115 = vector.extract_strided_slice %112 {offsets = [1, 0, 0], sizes = [1, 2, 128], strides = [1, 1, 1]} : vector<2x2x128xf32> to vector<1x2x128xf32>
    %116 = vector.shape_cast %115 : vector<1x2x128xf32> to vector<2x128xf32>
    %117 = arith.addf %114, %116 : vector<2x128xf32>
    %cst_35 = arith.constant dense<0.000000e+00> : vector<128xf32>
    %118 = vector.multi_reduction <add>, %117, %cst_35 [0] : vector<2x128xf32> to vector<128xf32>
    %119 = vector.shape_cast %118 : vector<128xf32> to vector<1x128xf32>
    %120 = vector.shape_cast %119 : vector<1x128xf32> to vector<1x1x128xf32>
    %c0_36 = arith.constant 0 : index
    %c9 = arith.constant 9 : index
    %c0_37 = arith.constant 0 : index
    %121 = vector.load %arg3[%c0_36, %c9, %c0_37] : memref<1x13x128xf32, #tpu.memory_space<vmem>>, vector<1x1x128xf32>
    tpu.vector_store %arg3[%c0_36, %c9, %c0_37], %120 {strides = array<i32>} : memref<1x13x128xf32, #tpu.memory_space<vmem>>, vector<1x1x128xf32>,
    %122 = arith.mulf %29, %51 : vector<2x2x128xf32>
    %cst_38 = arith.constant 0.000000e+00 : f32
    %123 = vector.broadcast %cst_38 : f32 to vector<2x2x128xf32>
    %124 = arith.select %4, %122, %123 : vector<2x2x128xi1>, vector<2x2x128xf32>
    %cst_39 = arith.constant 0.000000e+00 : f32
    %125 = vector.broadcast %cst_39 : f32 to vector<2x2x128xf32>
    %126 = arith.select %18, %124, %125 : vector<2x2x128xi1>, vector<2x2x128xf32>
    %127 = vector.extract_strided_slice %126 {offsets = [0, 0, 0], sizes = [1, 2, 128], strides = [1, 1, 1]} : vector<2x2x128xf32> to vector<1x2x128xf32>
    %128 = vector.shape_cast %127 : vector<1x2x128xf32> to vector<2x128xf32>
    %129 = vector.extract_strided_slice %126 {offsets = [1, 0, 0], sizes = [1, 2, 128], strides = [1, 1, 1]} : vector<2x2x128xf32> to vector<1x2x128xf32>
    %130 = vector.shape_cast %129 : vector<1x2x128xf32> to vector<2x128xf32>
    %131 = arith.addf %128, %130 : vector<2x128xf32>
    %cst_40 = arith.constant dense<0.000000e+00> : vector<128xf32>
    %132 = vector.multi_reduction <add>, %131, %cst_40 [0] : vector<2x128xf32> to vector<128xf32>
    %133 = vector.shape_cast %132 : vector<128xf32> to vector<1x128xf32>
    %134 = vector.shape_cast %133 : vector<1x128xf32> to vector<1x1x128xf32>
    %c0_41 = arith.constant 0 : index
    %c2 = arith.constant 2 : index
    %c0_42 = arith.constant 0 : index
    %135 = vector.load %arg3[%c0_41, %c2, %c0_42] : memref<1x13x128xf32, #tpu.memory_space<vmem>>, vector<1x1x128xf32>
    tpu.vector_store %arg3[%c0_41, %c2, %c0_42], %134 {strides = array<i32>} : memref<1x13x128xf32, #tpu.memory_space<vmem>>, vector<1x1x128xf32>,
    %136 = vector.extract_strided_slice %124 {offsets = [0, 0, 0], sizes = [1, 2, 128], strides = [1, 1, 1]} : vector<2x2x128xf32> to vector<1x2x128xf32>
    %137 = vector.shape_cast %136 : vector<1x2x128xf32> to vector<2x128xf32>
    %138 = vector.extract_strided_slice %124 {offsets = [1, 0, 0], sizes = [1, 2, 128], strides = [1, 1, 1]} : vector<2x2x128xf32> to vector<1x2x128xf32>
    %139 = vector.shape_cast %138 : vector<1x2x128xf32> to vector<2x128xf32>
    %140 = arith.addf %137, %139 : vector<2x128xf32>
    %cst_43 = arith.constant dense<0.000000e+00> : vector<128xf32>
    %141 = vector.multi_reduction <add>, %140, %cst_43 [0] : vector<2x128xf32> to vector<128xf32>
    %142 = vector.shape_cast %141 : vector<128xf32> to vector<1x128xf32>
    %143 = vector.shape_cast %142 : vector<1x128xf32> to vector<1x1x128xf32>
    %c0_44 = arith.constant 0 : index
    %c6 = arith.constant 6 : index
    %c0_45 = arith.constant 0 : index
    %144 = vector.load %arg3[%c0_44, %c6, %c0_45] : memref<1x13x128xf32, #tpu.memory_space<vmem>>, vector<1x1x128xf32>
    tpu.vector_store %arg3[%c0_44, %c6, %c0_45], %143 {strides = array<i32>} : memref<1x13x128xf32, #tpu.memory_space<vmem>>, vector<1x1x128xf32>,
    %cst_46 = arith.constant 1.000000e+00 : f32
    %cst_47 = arith.constant 0.000000e+00 : f32
    %145 = vector.broadcast %cst_46 : f32 to vector<2x2x128xf32>
    %146 = vector.broadcast %cst_47 : f32 to vector<2x2x128xf32>
    %147 = arith.select %18, %145, %146 : vector<2x2x128xi1>, vector<2x2x128xf32>
    %148 = vector.extract_strided_slice %147 {offsets = [0, 0, 0], sizes = [1, 2, 128], strides = [1, 1, 1]} : vector<2x2x128xf32> to vector<1x2x128xf32>
    %149 = vector.shape_cast %148 : vector<1x2x128xf32> to vector<2x128xf32>
    %150 = vector.extract_strided_slice %147 {offsets = [1, 0, 0], sizes = [1, 2, 128], strides = [1, 1, 1]} : vector<2x2x128xf32> to vector<1x2x128xf32>
    %151 = vector.shape_cast %150 : vector<1x2x128xf32> to vector<2x128xf32>
    %152 = arith.addf %149, %151 : vector<2x128xf32>
    %cst_48 = arith.constant dense<0.000000e+00> : vector<128xf32>
    %153 = vector.multi_reduction <add>, %152, %cst_48 [0] : vector<2x128xf32> to vector<128xf32>
    %154 = vector.shape_cast %153 : vector<128xf32> to vector<1x128xf32>
    %155 = vector.shape_cast %154 : vector<1x128xf32> to vector<1x1x128xf32>
    %c0_49 = arith.constant 0 : index
    %c10 = arith.constant 10 : index
    %c0_50 = arith.constant 0 : index
    %156 = vector.load %arg3[%c0_49, %c10, %c0_50] : memref<1x13x128xf32, #tpu.memory_space<vmem>>, vector<1x1x128xf32>
    tpu.vector_store %arg3[%c0_49, %c10, %c0_50], %155 {strides = array<i32>} : memref<1x13x128xf32, #tpu.memory_space<vmem>>, vector<1x1x128xf32>,
    %157 = arith.mulf %31, %51 : vector<2x2x128xf32>
    %cst_51 = arith.constant 0.000000e+00 : f32
    %158 = vector.broadcast %cst_51 : f32 to vector<2x2x128xf32>
    %159 = arith.select %4, %157, %158 : vector<2x2x128xi1>, vector<2x2x128xf32>
    %cst_52 = arith.constant 0.000000e+00 : f32
    %160 = vector.broadcast %cst_52 : f32 to vector<2x2x128xf32>
    %161 = arith.select %20, %159, %160 : vector<2x2x128xi1>, vector<2x2x128xf32>
    %162 = vector.extract_strided_slice %161 {offsets = [0, 0, 0], sizes = [1, 2, 128], strides = [1, 1, 1]} : vector<2x2x128xf32> to vector<1x2x128xf32>
    %163 = vector.shape_cast %162 : vector<1x2x128xf32> to vector<2x128xf32>
    %164 = vector.extract_strided_slice %161 {offsets = [1, 0, 0], sizes = [1, 2, 128], strides = [1, 1, 1]} : vector<2x2x128xf32> to vector<1x2x128xf32>
    %165 = vector.shape_cast %164 : vector<1x2x128xf32> to vector<2x128xf32>
    %166 = arith.addf %163, %165 : vector<2x128xf32>
    %cst_53 = arith.constant dense<0.000000e+00> : vector<128xf32>
    %167 = vector.multi_reduction <add>, %166, %cst_53 [0] : vector<2x128xf32> to vector<128xf32>
    %168 = vector.shape_cast %167 : vector<128xf32> to vector<1x128xf32>
    %169 = vector.shape_cast %168 : vector<1x128xf32> to vector<1x1x128xf32>
    %c0_54 = arith.constant 0 : index
    %c3 = arith.constant 3 : index
    %c0_55 = arith.constant 0 : index
    %170 = vector.load %arg3[%c0_54, %c3, %c0_55] : memref<1x13x128xf32, #tpu.memory_space<vmem>>, vector<1x1x128xf32>
    tpu.vector_store %arg3[%c0_54, %c3, %c0_55], %169 {strides = array<i32>} : memref<1x13x128xf32, #tpu.memory_space<vmem>>, vector<1x1x128xf32>,
    %171 = vector.extract_strided_slice %159 {offsets = [0, 0, 0], sizes = [1, 2, 128], strides = [1, 1, 1]} : vector<2x2x128xf32> to vector<1x2x128xf32>
    %172 = vector.shape_cast %171 : vector<1x2x128xf32> to vector<2x128xf32>
    %173 = vector.extract_strided_slice %159 {offsets = [1, 0, 0], sizes = [1, 2, 128], strides = [1, 1, 1]} : vector<2x2x128xf32> to vector<1x2x128xf32>
    %174 = vector.shape_cast %173 : vector<1x2x128xf32> to vector<2x128xf32>
    %175 = arith.addf %172, %174 : vector<2x128xf32>
    %cst_56 = arith.constant dense<0.000000e+00> : vector<128xf32>
    %176 = vector.multi_reduction <add>, %175, %cst_56 [0] : vector<2x128xf32> to vector<128xf32>
    %177 = vector.shape_cast %176 : vector<128xf32> to vector<1x128xf32>
    %178 = vector.shape_cast %177 : vector<1x128xf32> to vector<1x1x128xf32>
    %c0_57 = arith.constant 0 : index
    %c7 = arith.constant 7 : index
    %c0_58 = arith.constant 0 : index
    %179 = vector.load %arg3[%c0_57, %c7, %c0_58] : memref<1x13x128xf32, #tpu.memory_space<vmem>>, vector<1x1x128xf32>
    tpu.vector_store %arg3[%c0_57, %c7, %c0_58], %178 {strides = array<i32>} : memref<1x13x128xf32, #tpu.memory_space<vmem>>, vector<1x1x128xf32>,
    %cst_59 = arith.constant 1.000000e+00 : f32
    %cst_60 = arith.constant 0.000000e+00 : f32
    %180 = vector.broadcast %cst_59 : f32 to vector<2x2x128xf32>
    %181 = vector.broadcast %cst_60 : f32 to vector<2x2x128xf32>
    %182 = arith.select %20, %180, %181 : vector<2x2x128xi1>, vector<2x2x128xf32>
    %183 = vector.extract_strided_slice %182 {offsets = [0, 0, 0], sizes = [1, 2, 128], strides = [1, 1, 1]} : vector<2x2x128xf32> to vector<1x2x128xf32>
    %184 = vector.shape_cast %183 : vector<1x2x128xf32> to vector<2x128xf32>
    %185 = vector.extract_strided_slice %182 {offsets = [1, 0, 0], sizes = [1, 2, 128], strides = [1, 1, 1]} : vector<2x2x128xf32> to vector<1x2x128xf32>
    %186 = vector.shape_cast %185 : vector<1x2x128xf32> to vector<2x128xf32>
    %187 = arith.addf %184, %186 : vector<2x128xf32>
    %cst_61 = arith.constant dense<0.000000e+00> : vector<128xf32>
    %188 = vector.multi_reduction <add>, %187, %cst_61 [0] : vector<2x128xf32> to vector<128xf32>
    %189 = vector.shape_cast %188 : vector<128xf32> to vector<1x128xf32>
    %190 = vector.shape_cast %189 : vector<1x128xf32> to vector<1x1x128xf32>
    %c0_62 = arith.constant 0 : index
    %c11 = arith.constant 11 : index
    %c0_63 = arith.constant 0 : index
    %191 = vector.load %arg3[%c0_62, %c11, %c0_63] : memref<1x13x128xf32, #tpu.memory_space<vmem>>, vector<1x1x128xf32>
    tpu.vector_store %arg3[%c0_62, %c11, %c0_63], %190 {strides = array<i32>} : memref<1x13x128xf32, #tpu.memory_space<vmem>>, vector<1x1x128xf32>,
    %192 = vector.extract_strided_slice %50 {offsets = [0, 0, 0], sizes = [1, 2, 128], strides = [1, 1, 1]} : vector<2x2x128xf32> to vector<1x2x128xf32>
    %193 = vector.shape_cast %192 : vector<1x2x128xf32> to vector<2x128xf32>
    %194 = vector.extract_strided_slice %50 {offsets = [1, 0, 0], sizes = [1, 2, 128], strides = [1, 1, 1]} : vector<2x2x128xf32> to vector<1x2x128xf32>
    %195 = vector.shape_cast %194 : vector<1x2x128xf32> to vector<2x128xf32>
    %196 = arith.addf %193, %195 : vector<2x128xf32>
    %cst_64 = arith.constant dense<0.000000e+00> : vector<128xf32>
    %197 = vector.multi_reduction <add>, %196, %cst_64 [0] : vector<2x128xf32> to vector<128xf32>
    %198 = vector.shape_cast %197 : vector<128xf32> to vector<1x128xf32>
    %199 = vector.shape_cast %198 : vector<1x128xf32> to vector<1x1x128xf32>
    %c0_65 = arith.constant 0 : index
    %c12 = arith.constant 12 : index
    %c0_66 = arith.constant 0 : index
    %200 = vector.load %arg3[%c0_65, %c12, %c0_66] : memref<1x13x128xf32, #tpu.memory_space<vmem>>, vector<1x1x128xf32>
    tpu.vector_store %arg3[%c0_65, %c12, %c0_66], %199 {strides = array<i32>} : memref<1x13x128xf32, #tpu.memory_space<vmem>>, vector<1x1x128xf32>,
    return
  }
  func.func @transform_0(%arg0: i32) -> (i32, i32, i32, i32) {
    %c0_i32 = arith.constant 0 : i32
    %c0_i32_0 = arith.constant 0 : i32
    %c0_i32_1 = arith.constant 0 : i32
    %c0_i32_2 = arith.constant 0 : i32
    return %c0_i32, %c0_i32_0, %arg0, %c0_i32_1 : i32, i32, i32, i32
  }
  func.func @transform_1(%arg0: i32) -> (i32, i32, i32) {
    %c0_i32 = arith.constant 0 : i32
    %c0_i32_0 = arith.constant 0 : i32
    %c0_i32_1 = arith.constant 0 : i32
    return %c0_i32, %arg0, %c0_i32_0 : i32, i32, i32
  }
  func.func @transform_2(%arg0: i32) -> (i32, i32, i32) {
    %c0_i32 = arith.constant 0 : i32
    %c0_i32_0 = arith.constant 0 : i32
    %c0_i32_1 = arith.constant 0 : i32
    return %arg0, %c0_i32, %c0_i32_0 : i32, i32, i32
  }
}

</mosaic_0001>

<bundles_post_ra>
// kernel: tpu_custom_call.1
= control target key start
LH: loop header
LB: loop body
LE: loop exit
PB: predicated region body
PF: predicated region fallthrough
CT: control target
= control target key end

     0   :  { %7 = vsyncpa [#allocation3], 0  ;;  %s316_s9 = smov [#allocation2]   ;;  %s555_s0 = inlined_call_operand.hbm [shape: f32[2,4,2,128], index: 0, kind: input, shape index: {}]   ;;  %s556_s1 = inlined_call_operand.vmem [shape: s8[2,2,128], index: 1, kind: input, shape index: {}]   ;;  %s557_s2 = inlined_call_operand.vmem [shape: f32[1,13,128], index: 2, kind: output, shape index: {}]  }
   0x1   :  { %s13_s10 = sshll.u32 %s316_s9, 4  ;;  %s292_s13 = scalar_lea.hbm %s555_s0, 256  ;;  %s14_s10 = int_to_ptr.vmem [resolvable:$true] %s13_s10 }
   0x2   :  { %p293_p0 = scmp.ne.s32.totalorder %s555_s0, %s292_s13  ;;  %p296_p1 = scmp.lt.u32.totalorder %s292_s13, %s555_s0 }
   0x4   :  { %p298_p2 = pnand %p296_p1, %p293_p0 }
   0x6   :  { %301 = shalt.err (!%p298_p2)
}
   0x7   :  { %s302_s18 = scalar_lea.vmem %s14_s10, 256  ;;  %p307_p4 = scmp.lt.s32.totalorder %s14_s10, %s14_s10 }
   0x8   :  { %p303_p3 = scmp.ne.s32.totalorder %s14_s10, %s302_s18  ;;  %p308_p5 = scmp.lt.s32.totalorder %s302_s18, %s302_s18 }
   0xa   :  { %p309_p6 = por %p308_p5, %p307_p4 }
   0xc   :  { %p310_p7 = pnand %p309_p6, %p303_p3 }
   0xe   :  { %313 = shalt.err (!%p310_p7)
}
   0xf   :  { %s317_s19 = smov 32   ;;  %s318_s20 = smov 2  }
  0x10   :  { %19 = dma.hbm_to_vmem [thread:$0]  %s555_s0, 256, %s14_s10, [#allocation3], %s317_s19, %s317_s19, %s318_s20  }
  0x11   :  { %314 = dma.done.wait [#allocation3], 256  }
  0x12   :  { %315 = vsyncadd [#allocation3], 4294967040  ;;  %v347_v0 = vld [vmem:[#allocation2] sm:$0x3]  ;;  %v349_v1 = vld [vmem:[#allocation2 + $0x2] sm:$0x3] }
  0x13   :  { %v351_v2 = vld [vmem:[#allocation2 + $0x4] sm:$0x3]  ;;  %v353_v3 = vld [vmem:[#allocation2 + $0x8] sm:$0x3]  ;;  %v355_v4 = vld [vmem:[#allocation2 + $0xa] sm:$0x3]  ;;  %v47_v5 = vmax.f32 %v347_v0, %v349_v1 }
  0x14   :  { %v359_v6 = vld [vmem:[#allocation2 + $0x6] sm:$0x3]  ;;  %v361_v7 = vld [vmem:[#allocation2 + $0xc] sm:$0x3]  ;;  %v48_v8 = vmax.f32 %v353_v3, %v355_v4  ;;  %v365_v9 = vld [vmem:[#allocation2 + $0xe] sm:$0x3] }
  0x15   :  { %v33_v10 = vld [vmem:[%s556_s1] sm:$0x1]  ;;  %v49_v11 = vmax.f32 %v47_v5, %v351_v2  ;;  %v34_v12 = vld [vmem:[%s556_s1 + $0x1] sm:$0x1]  ;;  %vm116_vm0 = vcmask 1041408   ;;  %v319_v32 = vmov 0.0  }
  0x16   :  { %v50_v13 = vmax.f32 %v48_v8, %v361_v7  ;;  %v378_v15 = vunpack.c.0.s8 %v33_v10  ;;  %v383_v17 = vunpack.c.0.s8 %v34_v12 }
  0x17   :  { %v376_v14 = vmax.f32 %v49_v11, %v359_v6 }
  0x18   :  { %v381_v16 = vmax.f32 %v50_v13, %v365_v9  ;;  %vm39_vm1 = vcmp.eq.s32.totalorder %v378_v15, 0  ;;  %vm40_vm2 = vcmp.eq.s32.totalorder %v383_v17, 0  ;;  %vm41_vm3 = vcmp.eq.s32.totalorder %v378_v15, 1 }
  0x19   :  { %v53_v18 = vsub.f32 %v347_v0, %v376_v14  ;;  %v59_v19 = vsub.f32 %v349_v1, %v376_v14  ;;  %v65_v20 = vsub.f32 %v351_v2, %v376_v14  ;;  %v71_v26 = vsub.f32 %v359_v6, %v376_v14 }
  0x1a   :  { %v54_v21 = vsub.f32 %v353_v3, %v381_v16  ;;  %v60_v22 = vsub.f32 %v355_v4, %v381_v16  ;;  %v66_v23 = vsub.f32 %v361_v7, %v381_v16  ;;  %v72_v29 = vsub.f32 %v365_v9, %v381_v16 }
  0x1b   :  { %v55_v24 = vmul.f32 1.442695, %v53_v18  ;;  %v61_v25 = vmul.f32 1.442695, %v59_v19  ;;  %v67_v30 = vmul.f32 1.442695, %v65_v20 }
  0x1c   :  { %v57_v27 = vmul.f32 1.442695, %v54_v21  ;;  %v63_v28 = vmul.f32 1.442695, %v60_v22  ;;  %v69_v31 = vmul.f32 1.442695, %v66_v23 }
  0x1d   :  { %268 = vpow2.f32 %v55_v24  ;;  %v134_v33 = vsel %vm39_vm1, 1.0, %v319_v32  ;;  %v135_v34 = vsel %vm40_vm2, 1.0, %v319_v32  ;;  %v73_v35 = vmul.f32 1.442695, %v71_v26 }
  0x1e   :  { %270 = vpow2.f32 %v57_v27  ;;  %v136_v36 = vadd.f32 %v135_v34, %v134_v33  ;;  %v75_v37 = vmul.f32 1.442695, %v72_v29  ;;  %vm42_vm4 = vcmp.eq.s32.totalorder %v383_v17, 1 }
  0x1f   :  { %272 = vpow2.f32 %v61_v25  ;;  %v169_v38 = vsel %vm41_vm3, 1.0, %v319_v32  ;;  %v170_v40 = vsel %vm42_vm4, 1.0, %v319_v32  ;;  %vm43_vm5 = vcmp.eq.s32.totalorder %v378_v15, 2 }
  0x20   :  { %274 = vpow2.f32 %v63_v28  ;;  %v137_v39 = vsel %vm116_vm0, %v136_v36, 0.0  ;;  %v171_v42 = vadd.f32 %v170_v40, %v169_v38  ;;  %v204_v43 = vsel %vm43_vm5, 1.0, %v319_v32 }
  0x21   :  { %276 = vpow2.f32 %v67_v30  ;;  %v138_v41 = vrot.slane %v137_v39, 4  ;;  %vm44_vm6 = vcmp.eq.s32.totalorder %v383_v17, 2  ;;  %vm45_vm7 = vcmp.eq.s32.totalorder %v378_v15, 3 }
  0x22   :  { %278 = vpow2.f32 %v69_v31  ;;  %v172_v45 = vsel %vm116_vm0, %v171_v42, 0.0  ;;  %v205_v47 = vsel %vm44_vm6, 1.0, %v319_v32  ;;  %vm46_vm8 = vcmp.eq.s32.totalorder %v383_v17, 3 }
  0x23   :  { %280 = vpow2.f32 %v73_v35  ;;  %v139_v44 = vadd.f32 %v138_v41, %v137_v39  ;;  %v173_v46 = vrot.slane %v172_v45, 4  ;;  %v206_v49 = vadd.f32 %v205_v47, %v204_v43 }
  0x24   :  { %282 = vpow2.f32 %v75_v37  ;;  %v239_v52 = vsel %vm45_vm7, 1.0, %v319_v32  ;;  %v240_v53 = vsel %vm46_vm8, 1.0, %v319_v32  ;;  %v89_v20 = vsel %vm39_vm1, %v347_v0, 0.0 }
  0x25   :  { %v140_v48 = vrot.slane %v139_v44, 2  ;;  %v174_v51 = vadd.f32 %v173_v46, %v172_v45  ;;  %v207_v56 = vsel %vm116_vm0, %v206_v49, 0.0  ;;  %v241_v57 = vadd.f32 %v240_v53, %v239_v52 }
  0x26   :  { %v208_v60 = vrot.slane %v207_v56, 4  ;;  %v90_v29 = vsel %vm40_vm2, %v353_v3, 0.0  ;;  %v91_v0 = vsel %vm41_vm3, %v349_v1, 0.0  ;;  %v92_v30 = vsel %vm42_vm4, %v355_v4, 0.0 }
  0x27   :  { %v423_v50 = vpop.eup %268  ;;  %v141_v55 = vadd.f32 %v140_v48, %v139_v44  ;;  %v175_v59 = vrot.slane %v174_v51, 2  ;;  %v242_v5 = vsel %vm116_vm0, %v241_v57, 0.0  ;;  %v93_v36 = vadd.f32 %v91_v0, %v89_v20 }
  0x28   :  { %v429_v54 = vpop.eup %270  ;;  %v209_v12 = vadd.f32 %v208_v60, %v207_v56  ;;  %v243_v13 = vrot.slane %v242_v5, 4  ;;  %v94_v37 = vadd.f32 %v92_v30, %v90_v29  ;;  %v95_v1 = vsel %vm43_vm5, %v351_v2, 0.0 }
  0x29   :  { %v273_v58 = vpop.eup %272  ;;  %v142_v63 = vrot.slane %v141_v55, 1  ;;  %v176_v11 = vadd.f32 %v175_v59, %v174_v51  ;;  %v96_v4 = vsel %vm44_vm6, %v361_v7, 0.0  ;;  %v97_v41 = vadd.f32 %v95_v1, %v93_v36 }
  0x2a   :  { %v275_v61 = vpop.eup %274  ;;  %v77_v62 = vadd.f32 %v273_v58, %v423_v50  ;;  %v210_v25 = vrot.slane %v209_v12, 2  ;;  %v244_v26 = vadd.f32 %v243_v13, %v242_v5  ;;  %v98_v42 = vadd.f32 %v96_v4, %v94_v37 }
  0x2b   :  { %v277_v8 = vpop.eup %276  ;;  %v78_v10 = vadd.f32 %v275_v61, %v429_v54  ;;  %v143_v21 = vadd.f32 %v142_v63, %v141_v55  ;;  %v177_v24 = vrot.slane %v176_v11, 1  ;;  %v99_v43 = vsel %vm45_vm7, %v359_v6, 0.0 }
  0x2c   :  { %v279_v18 = vpop.eup %278  ;;  %v79_v19 = vadd.f32 %v277_v8, %v77_v62  ;;  %v211_v33 = vadd.f32 %v210_v25, %v209_v12  ;;  %v245_v34 = vrot.slane %v244_v26, 2  ;;  %v100_v2 = vsel %vm46_vm8, %v365_v9, 0.0 }
  0x2d   :  { %v281_v22 = vpop.eup %280  ;;  %v80_v23 = vadd.f32 %v279_v18, %v78_v10  ;;  %144 = vst [vmem:[%s557_s2 + $0x8] sm:$0x1] %v143_v21  ;;  %v178_v32 = vadd.f32 %v177_v24, %v176_v11  ;;  %vm37_vm9 = vcmp.ge.s32.totalorder %v378_v15, 0  ;;  %vm38_vm10 = vcmp.ge.s32.totalorder %v383_v17, 0 }
  0x2e   :  { %v283_v27 = vpop.eup %282  ;;  %v81_v28 = vadd.f32 %v281_v22, %v79_v19  ;;  %v212_v3 = vrot.slane %v211_v33, 1  ;;  %v246_v35 = vadd.f32 %v245_v34, %v244_v26  ;;  %v473_v44 = vadd.f32 %v99_v43, %v97_v41 }
  0x2f   :  { %v82_v31 = vadd.f32 %v283_v27, %v80_v23  ;;  %179 = vst [vmem:[%s557_s2 + $0x9] sm:$0x1] %v178_v32  ;;  %v475_v45 = vadd.f32 %v100_v2, %v98_v42 }
  0x30   :  { %284 = vrcp.f32 %v81_v28  ;;  %v213_v38 = vadd.f32 %v212_v3, %v211_v33  ;;  %v247_v39 = vrot.slane %v246_v35, 1 }
  0x31   :  { %286 = vrcp.f32 %v82_v31 }
  0x32   :  { %214 = vst [vmem:[%s557_s2 + $0xa] sm:$0x1] %v213_v38  ;;  %v248_v40 = vadd.f32 %v247_v39, %v246_v35  ;;  %288 = vlog2.f32 %v81_v28 }
  0x33   :  { %290 = vlog2.f32 %v82_v31 }
  0x34   :  { %249 = vst [vmem:[%s557_s2 + $0xb] sm:$0x1] %v248_v40 }
  0x3a   :  { %v285_v7 = vpop.eup %284 }
  0x3b   :  { %v287_v6 = vpop.eup %286  ;;  %v109_v46 = vmul.f32 %v285_v7, %v423_v50  ;;  %v145_v47 = vmul.f32 %v285_v7, %v273_v58  ;;  %v180_v9 = vmul.f32 %v285_v7, %v277_v8  ;;  %v215_v48 = vmul.f32 %v285_v7, %v281_v22 }
  0x3c   :  { %v110_v49 = vmul.f32 %v287_v6, %v429_v54  ;;  %v146_v51 = vmul.f32 %v287_v6, %v275_v61  ;;  %v181_v52 = vmul.f32 %v287_v6, %v279_v18  ;;  %v216_v53 = vmul.f32 %v287_v6, %v283_v27  ;;  %v289_v25 = vpop.eup %288 }
  0x3d   :  { %v111_v55 = vsel %vm37_vm9, %v109_v46, 0.0  ;;  %v147_v56 = vsel %vm37_vm9, %v145_v47, 0.0  ;;  %v182_v57 = vsel %vm37_vm9, %v180_v9, 0.0  ;;  %v217_v50 = vsel %vm37_vm9, %v215_v48, 0.0  ;;  %v291_v0 = vpop.eup %290 }
  0x3e   :  { %v112_v58 = vsel %vm38_vm10, %v110_v49, 0.0  ;;  %v113_v54 = vsel %vm39_vm1, %v111_v55, 0.0  ;;  %v148_v59 = vsel %vm38_vm10, %v146_v51, 0.0  ;;  %v149_v60 = vsel %vm41_vm3, %v147_v56, 0.0 }
  0x3f   :  { %v114_v61 = vsel %vm40_vm2, %v112_v58, 0.0  ;;  %v125_v62 = vadd.f32 %v112_v58, %v111_v55  ;;  %v150_v63 = vsel %vm42_vm4, %v148_v59, 0.0  ;;  %v160_v5 = vadd.f32 %v148_v59, %v147_v56 }
  0x40   :  { %v115_v8 = vadd.f32 %v114_v61, %v113_v54  ;;  %v151_v10 = vadd.f32 %v150_v63, %v149_v60  ;;  %v183_v11 = vsel %vm38_vm10, %v181_v52, 0.0  ;;  %v184_v12 = vsel %vm43_vm5, %v182_v57, 0.0 }
  0x41   :  { %v126_v13 = vsel %vm116_vm0, %v125_v62, 0.0  ;;  %v161_v18 = vsel %vm116_vm0, %v160_v5, 0.0  ;;  %v185_v19 = vsel %vm44_vm6, %v183_v11, 0.0  ;;  %v195_v20 = vadd.f32 %v183_v11, %v182_v57 }
  0x42   :  { %v117_v21 = vsel %vm116_vm0, %v115_v8, 0.0  ;;  %v127_v22 = vrot.slane %v126_v13, 4  ;;  %v152_v23 = vsel %vm116_vm0, %v151_v10, 0.0  ;;  %v162_v24 = vrot.slane %v161_v18, 4 }
  0x43   :  { %v118_v26 = vrot.slane %v117_v21, 4  ;;  %v153_v27 = vrot.slane %v152_v23, 4  ;;  %v186_v28 = vadd.f32 %v185_v19, %v184_v12  ;;  %v196_v29 = vsel %vm116_vm0, %v195_v20, 0.0 }
  0x44   :  { %v128_v30 = vadd.f32 %v127_v22, %v126_v13  ;;  %v163_v31 = vadd.f32 %v162_v24, %v161_v18  ;;  %v197_v32 = vrot.slane %v196_v29, 4  ;;  %v218_v33 = vsel %vm38_vm10, %v216_v53, 0.0 }
  0x45   :  { %v119_v34 = vadd.f32 %v118_v26, %v117_v21  ;;  %v154_v3 = vadd.f32 %v153_v27, %v152_v23  ;;  %v187_v35 = vsel %vm116_vm0, %v186_v28, 0.0  ;;  %v219_v36 = vsel %vm45_vm7, %v217_v50, 0.0 }
  0x46   :  { %v129_v37 = vrot.slane %v128_v30, 2  ;;  %v164_v1 = vrot.slane %v163_v31, 2  ;;  %v188_v4 = vrot.slane %v187_v35, 4  ;;  %v198_v38 = vadd.f32 %v197_v32, %v196_v29 }
  0x47   :  { %v120_v39 = vrot.slane %v119_v34, 2  ;;  %v155_v40 = vrot.slane %v154_v3, 2  ;;  %v220_v41 = vsel %vm46_vm8, %v218_v33, 0.0  ;;  %v230_v42 = vadd.f32 %v218_v33, %v217_v50 }
  0x48   :  { %v130_v43 = vadd.f32 %v129_v37, %v128_v30  ;;  %v165_v2 = vadd.f32 %v164_v1, %v163_v31  ;;  %v189_v7 = vadd.f32 %v188_v4, %v187_v35  ;;  %v199_v6 = vrot.slane %v198_v38, 2 }
  0x49   :  { %v121_v46 = vadd.f32 %v120_v39, %v119_v34  ;;  %v156_v47 = vadd.f32 %v155_v40, %v154_v3  ;;  %v221_v9 = vadd.f32 %v220_v41, %v219_v36  ;;  %v231_v48 = vsel %vm116_vm0, %v230_v42, 0.0 }
  0x4a   :  { %v131_v49 = vrot.slane %v130_v43, 1  ;;  %v166_v51 = vrot.slane %v165_v2, 1  ;;  %v190_v52 = vrot.slane %v189_v7, 2  ;;  %v200_v53 = vadd.f32 %v199_v6, %v198_v38 }
  0x4b   :  { %v122_v55 = vrot.slane %v121_v46, 1  ;;  %v157_v56 = vrot.slane %v156_v47, 1  ;;  %v222_v57 = vsel %vm116_vm0, %v221_v9, 0.0  ;;  %v232_v58 = vrot.slane %v231_v48, 4 }
  0x4c   :  { %v132_v54 = vadd.f32 %v131_v49, %v130_v43  ;;  %v167_v50 = vadd.f32 %v166_v51, %v165_v2  ;;  %v191_v59 = vadd.f32 %v190_v52, %v189_v7  ;;  %v201_v60 = vrot.slane %v200_v53, 1 }
  0x4d   :  { %v123_v61 = vadd.f32 %v122_v55, %v121_v46  ;;  %v158_v62 = vadd.f32 %v157_v56, %v156_v47  ;;  %v223_v63 = vrot.slane %v222_v57, 4  ;;  %v233_v5 = vadd.f32 %v232_v58, %v231_v48 }
  0x4e   :  { %133 = vst [vmem:[%s557_s2 + $0x4] sm:$0x1] %v132_v54  ;;  %168 = vst [vmem:[%s557_s2 + $0x5] sm:$0x1] %v167_v50  ;;  %v192_v8 = vrot.slane %v191_v59, 1  ;;  %v202_v10 = vadd.f32 %v201_v60, %v200_v53 }
  0x4f   :  { %v84_v11 = vmul.f32 0.6931472, %v289_v25  ;;  %v86_v12 = vmul.f32 0.6931472, %v291_v0  ;;  %124 = vst [vmem:[%s557_s2] sm:$0x1] %v123_v61  ;;  %v224_v13 = vadd.f32 %v223_v63, %v222_v57  ;;  %v234_v18 = vrot.slane %v233_v5, 2 }
  0x50   :  { %159 = vst [vmem:[%s557_s2 + $0x1] sm:$0x1] %v158_v62  ;;  %v193_v19 = vadd.f32 %v192_v8, %v191_v59  ;;  %203 = vst [vmem:[%s557_s2 + $0x6] sm:$0x1] %v202_v10 }
  0x51   :  { %v87_v20 = vadd.f32 %v84_v11, %v376_v14  ;;  %v88_v21 = vadd.f32 %v86_v12, %v381_v16  ;;  %v225_v22 = vrot.slane %v224_v13, 2  ;;  %v235_v23 = vadd.f32 %v234_v18, %v233_v5 }
  0x52   :  { %194 = vst [vmem:[%s557_s2 + $0x2] sm:$0x1] %v193_v19 }
  0x53   :  { %v103_v24 = vsub.f32 %v87_v20, %v473_v44  ;;  %v104_v25 = vsub.f32 %v88_v21, %v475_v45  ;;  %v226_v26 = vadd.f32 %v225_v22, %v224_v13  ;;  %v236_v27 = vrot.slane %v235_v23, 1 }
  0x55   :  { %v105_v28 = vsel %vm37_vm9, %v103_v24, 0.0  ;;  %v106_v14 = vsel %vm38_vm10, %v104_v25, 0.0  ;;  %v227_v29 = vrot.slane %v226_v26, 1  ;;  %v237_v16 = vadd.f32 %v236_v27, %v235_v23 }
  0x56   :  { %v250_v0 = vadd.f32 %v106_v14, %v105_v28 }
  0x57   :  { %v228_v30 = vadd.f32 %v227_v29, %v226_v26  ;;  %238 = vst [vmem:[%s557_s2 + $0x7] sm:$0x1] %v237_v16 }
  0x58   :  { %v251_v44 = vsel %vm116_vm0, %v250_v0, 0.0 }
  0x59   :  { %v252_v31 = vrot.slane %v251_v44, 4  ;;  %229 = vst [vmem:[%s557_s2 + $0x3] sm:$0x1] %v228_v30 }
  0x5b   :  { %v253_v15 = vadd.f32 %v252_v31, %v251_v44 }
  0x5d   :  { %v254_v45 = vrot.slane %v253_v15, 2 }
  0x5f   :  { %v255_v32 = vadd.f32 %v254_v45, %v253_v15 }
  0x61   :  { %v256_v17 = vrot.slane %v255_v32, 1 }
  0x63   :  { %v257_v33 = vadd.f32 %v256_v17, %v255_v32 }
  0x65   :  { %258 = vst [vmem:[%s557_s2 + $0xc] sm:$0x1] %v257_v33 }
  0x66   :  { %263 = vsyncpa [#allocation3], 1 }

</bundles_post_ra>
